<compile_context>
chip_gen: v7x
topology: tpu7x:2x2x1
jax: 0.10.0
libtpu: 0.0.40
codegen_flags: <defaults>
</compile_context>

<pallas_src>
import jax
import jax.numpy as jnp
from jax.experimental import pallas as pl
from jax.experimental.pallas import tpu as pltpu


def actor_kernel(x_ref, w1_ref, b1_ref, w2_ref, b2_ref, w3_ref, b3_ref, o_ref):
    # obs tile arrives in f32; downcast to the weight dtype (bf16) in-kernel.
    x = x_ref[...].astype(w1_ref.dtype)
    # Layer 1: obs_dim -> 512, ReLU (relu commutes with the bf16 downcast,
    # so do the max on bf16 vregs -> half the VALU work on the widest layer).
    h1 = jnp.dot(x, w1_ref[...], preferred_element_type=jnp.float32) + b1_ref[...]
    h1 = jnp.maximum(h1.astype(w2_ref.dtype), 0.0)
    # Layer 2: 512 -> 128, ReLU
    h2 = jnp.dot(h1, w2_ref[...], preferred_element_type=jnp.float32) + b2_ref[...]
    h2 = jnp.maximum(h2.astype(w3_ref.dtype), 0.0)
    # Layer 3: 128 -> action_dim, tanh * 10 (tanh rides the otherwise-idle EUP slot)
    h3 = jnp.dot(h2, w3_ref[...], preferred_element_type=jnp.float32) + b3_ref[...]
    o_ref[...] = (jnp.tanh(h3) * 10.0).astype(o_ref.dtype)


def _round_up(x, m):
    return ((x + m - 1) // m) * m


def actor_forward(obs, params, *, block_b=1024):
    """obs: [B, obs_dim] (f32). params: dict of w1,b1,w2,b2,w3,b3 (weights [in,out])."""
    w1, b1, w2, b2, w3, b3 = (
        params["w1"], params["b1"], params["w2"],
        params["b2"], params["w3"], params["b3"],
    )
    B, obs_dim = obs.shape
    action_dim = w3.shape[1]

    # Batch tile selection:
    #  - tiny batches: one tile covering the whole (unpadded) batch;
    #  - otherwise: >= 2 tiles (keeps both v7x TensorCores busy; harmless on
    #    v5e/v6e), each a multiple of 16 rows, capped at block_b.
    if B <= 16:
        tb = B
    else:
        tb = min(_round_up(block_b, 16), _round_up(pl.cdiv(B, 2), 16))
    grid = (pl.cdiv(B, tb),)

    # Weights/biases: constant block index -> stay VMEM-resident across tiles
    # (Pallas skips the re-DMA when the block index doesn't change).
    resident = lambda shape: pl.BlockSpec(shape, lambda i: (0, 0))

    return pl.pallas_call(
        actor_kernel,
        out_shape=jax.ShapeDtypeStruct((B, action_dim), jnp.float32),
        grid=grid,
        in_specs=[
            pl.BlockSpec((tb, obs_dim), lambda i: (i, 0)),
            resident(w1.shape), resident(b1.shape),
            resident(w2.shape), resident(b2.shape),
            resident(w3.shape), resident(b3.shape),
        ],
        out_specs=pl.BlockSpec((tb, action_dim), lambda i: (i, 0)),
        compiler_params=pltpu.CompilerParams(
            dimension_semantics=("parallel",),
        ),
    )(obs, w1, b1, w2, b2, w3, b3)


def actor_reference(obs, params):
    """Pure-JAX reference using the same precision policy as the kernel."""
    dt = params["w1"].dtype
    x = obs.astype(dt)
    h1 = jnp.dot(x, params["w1"], preferred_element_type=jnp.float32) + params["b1"]
    h1 = jnp.maximum(h1.astype(dt), 0.0)
    h2 = jnp.dot(h1, params["w2"], preferred_element_type=jnp.float32) + params["b2"]
    h2 = jnp.maximum(h2.astype(dt), 0.0)
    h3 = jnp.dot(h2, params["w3"], preferred_element_type=jnp.float32) + params["b3"]
    return jnp.tanh(h3) * 10.0


def init_actor_params(key, obs_dim, action_dim, init_w=0.001,
                      weights_dtype=jnp.bfloat16):
    """Mirrors the PyTorch module after init_weights():
       - linear1/linear2 weights: fanin_init -> uniform(+-1/sqrt(fan_in))
       - linear3 weight: uniform(+-init_w)
       - biases are NOT touched by init_weights, so they keep nn.Linear's
         default uniform(+-1/sqrt(fan_in)).
       Weights stored [in, out] (transposed vs torch [out, in]); weights cast to
       `weights_dtype` (bf16) for MXU-native matmuls, biases kept f32."""
    k1, k2, k3, kb1, kb2, kb3 = jax.random.split(key, 6)

    def fanin_uniform(k, fan_in, fan_out):
        v = 1.0 / jnp.sqrt(jnp.float32(fan_in))
        return jax.random.uniform(k, (fan_in, fan_out), jnp.float32, -v, v)

    w1 = fanin_uniform(k1, obs_dim, 512)
    w2 = fanin_uniform(k2, 512, 128)
    w3 = jax.random.uniform(k3, (128, action_dim), jnp.float32, -init_w, init_w)
    b1 = jax.random.uniform(kb1, (1, 512), jnp.float32,
                            -1.0 / jnp.sqrt(jnp.float32(obs_dim)),
                            1.0 / jnp.sqrt(jnp.float32(obs_dim)))
    b2 = jax.random.uniform(kb2, (1, 128), jnp.float32,
                            -1.0 / jnp.sqrt(512.0), 1.0 / jnp.sqrt(512.0))
    b3 = jax.random.uniform(kb3, (1, action_dim), jnp.float32,
                            -1.0 / jnp.sqrt(128.0), 1.0 / jnp.sqrt(128.0))
    return {
        "w1": w1.astype(weights_dtype), "b1": b1,
        "w2": w2.astype(weights_dtype), "b2": b2,
        "w3": w3.astype(weights_dtype), "b3": b3,
        # keep f32 copies around for the full-precision sanity check
        "_w1_f32": w1, "_w2_f32": w2, "_w3_f32": w3,
    }


if __name__ == "__main__":
    key = jax.random.PRNGKey(0)
    k_obs, k_obs_big, k_params = jax.random.split(key, 3)

    obs_dim = 32
    action_dim = 8
    params = init_actor_params(k_params, obs_dim, action_dim)

    # --- small-batch check (single grid point, block == full array) ---
    batch = 2
    obs = jax.random.normal(k_obs, (batch, obs_dim), jnp.float32)
    out = actor_forward(obs, params)
    jax.block_until_ready(out)
    assert out.shape == (batch, action_dim)
    assert out.dtype == jnp.float32

    ref = actor_reference(obs, params)
    assert jnp.allclose(out, ref, atol=1e-2, rtol=1e-2), "mismatch vs bf16 reference"

    # Full-f32 reference: confirms the bf16 precision policy stays close to the
    # original module's f32 math (tanh*10 output, loose tolerance).
    # TODO(synk): if action accuracy matters for high-dynamic-range obs, keep
    # the layer-1 LHS in f32 (weights can stay bf16) at negligible cost.
    h1 = jnp.maximum(obs @ params["_w1_f32"] + params["b1"], 0.0)
    h2 = jnp.maximum(h1 @ params["_w2_f32"] + params["b2"], 0.0)
    ref_f32 = jnp.tanh(h2 @ params["_w3_f32"] + params["b3"]) * 10.0
    assert jnp.allclose(out, ref_f32, atol=5e-2, rtol=5e-2), "mismatch vs f32 reference"

    # --- larger batch exercises the parallel batch grid (2 tiles of 256) ---
    big_batch = 512
    obs_big = jax.random.normal(k_obs_big, (big_batch, obs_dim), jnp.float32)
    out_big = actor_forward(obs_big, params)
    jax.block_until_ready(out_big)
    ref_big = actor_reference(obs_big, params)
    assert out_big.shape == (big_batch, action_dim)
    assert jnp.allclose(out_big, ref_big, atol=1e-2, rtol=1e-2), "mismatch on tiled batch"

    # --- batch not a multiple of the tile (last tile padded by Pallas) ---
    odd_batch = 100
    obs_odd = jax.random.normal(k_obs_big, (odd_batch, obs_dim), jnp.float32)
    out_odd = actor_forward(obs_odd, params)
    jax.block_until_ready(out_odd)
    ref_odd = actor_reference(obs_odd, params)
    assert out_odd.shape == (odd_batch, action_dim)
    assert jnp.allclose(out_odd, ref_odd, atol=1e-2, rtol=1e-2), "mismatch on ragged batch"

    print("KERNEL_OK")
</pallas_src>

<mosaic_0001>
module attributes {stable_mosaic.version = 11 : i64} {
  func.func @actor_kernel(%arg0: i32, %arg1: memref<2x32xf32, #tpu.memory_space<vmem>>, %arg2: memref<32x512xbf16, #tpu.memory_space<vmem>>, %arg3: memref<1x512xf32, #tpu.memory_space<vmem>>, %arg4: memref<512x128xbf16, #tpu.memory_space<vmem>>, %arg5: memref<1x128xf32, #tpu.memory_space<vmem>>, %arg6: memref<128x8xbf16, #tpu.memory_space<vmem>>, %arg7: memref<1x8xf32, #tpu.memory_space<vmem>>, %arg8: memref<2x8xf32, #tpu.memory_space<vmem>>) attributes {dimension_semantics = [#tpu.dimension_semantics<parallel>], iteration_bounds = array<i64: 1>, scalar_prefetch = 0 : i64, scratch_operands = 0 : i64, tpu.core_type = #tpu.core_type<tc>, window_params = [{transform_indices = @transform_0, window_bounds = array<i64: 2, 32>}, {pipeline_mode = #tpu.pipeline_mode<synchronous>, transform_indices = @transform_1, window_bounds = array<i64: 32, 512>}, {pipeline_mode = #tpu.pipeline_mode<synchronous>, transform_indices = @transform_2, window_bounds = array<i64: 1, 512>}, {pipeline_mode = #tpu.pipeline_mode<synchronous>, transform_indices = @transform_3, window_bounds = array<i64: 512, 128>}, {pipeline_mode = #tpu.pipeline_mode<synchronous>, transform_indices = @transform_4, window_bounds = array<i64: 1, 128>}, {pipeline_mode = #tpu.pipeline_mode<synchronous>, transform_indices = @transform_5, window_bounds = array<i64: 128, 8>}, {pipeline_mode = #tpu.pipeline_mode<synchronous>, transform_indices = @transform_6, window_bounds = array<i64: 1, 8>}, {transform_indices = @transform_7, window_bounds = array<i64: 2, 8>}]} {
    %c0 = arith.constant 0 : index
    %c0_0 = arith.constant 0 : index
    %0 = vector.load %arg1[%c0, %c0_0] : memref<2x32xf32, #tpu.memory_space<vmem>>, vector<2x32xf32>
    %1 = arith.truncf %0 : vector<2x32xf32> to vector<2x32xbf16>
    %c0_1 = arith.constant 0 : index
    %c0_2 = arith.constant 0 : index
    %2 = vector.load %arg2[%c0_1, %c0_2] : memref<32x512xbf16, #tpu.memory_space<vmem>>, vector<32x512xbf16>
    %cst = arith.constant dense<0.000000e+00> : vector<2x512xf32>
    %3 = tpu.matmul %1, %2, %cst {dimension_numbers = #tpu.dot_dimension_numbers<[1], [0], [0], [1], [0, 0, 1, 1], [], []>} : vector<2x32xbf16>, vector<32x512xbf16>, vector<2x512xf32> -> vector<2x512xf32>
    %c0_3 = arith.constant 0 : index
    %c0_4 = arith.constant 0 : index
    %4 = vector.load %arg3[%c0_3, %c0_4] : memref<1x512xf32, #tpu.memory_space<vmem>>, vector<1x512xf32>
    %5 = vector.broadcast %4 : vector<1x512xf32> to vector<2x512xf32>
    %6 = arith.addf %3, %5 : vector<2x512xf32>
    %7 = arith.truncf %6 : vector<2x512xf32> to vector<2x512xbf16>
    %cst_5 = arith.constant 0.000000e+00 : bf16
    %8 = vector.broadcast %cst_5 : bf16 to vector<2x512xbf16>
    %9 = arith.maximumf %7, %8 : vector<2x512xbf16>
    %c0_6 = arith.constant 0 : index
    %c0_7 = arith.constant 0 : index
    %10 = vector.load %arg4[%c0_6, %c0_7] : memref<512x128xbf16, #tpu.memory_space<vmem>>, vector<512x128xbf16>
    %cst_8 = arith.constant dense<0.000000e+00> : vector<2x128xf32>
    %11 = tpu.matmul %9, %10, %cst_8 {dimension_numbers = #tpu.dot_dimension_numbers<[1], [0], [0], [1], [0, 0, 1, 1], [], []>} : vector<2x512xbf16>, vector<512x128xbf16>, vector<2x128xf32> -> vector<2x128xf32>
    %c0_9 = arith.constant 0 : index
    %c0_10 = arith.constant 0 : index
    %12 = vector.load %arg5[%c0_9, %c0_10] : memref<1x128xf32, #tpu.memory_space<vmem>>, vector<1x128xf32>
    %13 = vector.broadcast %12 : vector<1x128xf32> to vector<2x128xf32>
    %14 = arith.addf %11, %13 : vector<2x128xf32>
    %15 = arith.truncf %14 : vector<2x128xf32> to vector<2x128xbf16>
    %cst_11 = arith.constant 0.000000e+00 : bf16
    %16 = vector.broadcast %cst_11 : bf16 to vector<2x128xbf16>
    %17 = arith.maximumf %15, %16 : vector<2x128xbf16>
    %c0_12 = arith.constant 0 : index
    %c0_13 = arith.constant 0 : index
    %18 = vector.load %arg6[%c0_12, %c0_13] : memref<128x8xbf16, #tpu.memory_space<vmem>>, vector<128x8xbf16>
    %cst_14 = arith.constant dense<0.000000e+00> : vector<2x8xf32>
    %19 = tpu.matmul %17, %18, %cst_14 {dimension_numbers = #tpu.dot_dimension_numbers<[1], [0], [0], [1], [0, 0, 1, 1], [], []>} : vector<2x128xbf16>, vector<128x8xbf16>, vector<2x8xf32> -> vector<2x8xf32>
    %c0_15 = arith.constant 0 : index
    %c0_16 = arith.constant 0 : index
    %20 = vector.load %arg7[%c0_15, %c0_16] : memref<1x8xf32, #tpu.memory_space<vmem>>, vector<1x8xf32>
    %21 = vector.broadcast %20 : vector<1x8xf32> to vector<2x8xf32>
    %22 = arith.addf %19, %21 : vector<2x8xf32>
    %23 = math.tanh %22 : vector<2x8xf32>
    %cst_17 = arith.constant 1.000000e+01 : f32
    %24 = vector.broadcast %cst_17 : f32 to vector<2x8xf32>
    %25 = arith.mulf %23, %24 : vector<2x8xf32>
    %c0_18 = arith.constant 0 : index
    %c0_19 = arith.constant 0 : index
    %26 = vector.load %arg8[%c0_18, %c0_19] : memref<2x8xf32, #tpu.memory_space<vmem>>, vector<2x8xf32>
    tpu.vector_store %arg8[%c0_18, %c0_19], %25 {strides = array<i32>} : memref<2x8xf32, #tpu.memory_space<vmem>>, vector<2x8xf32>,
    return
  }
  func.func @transform_0(%arg0: i32) -> (i32, i32) {
    %c0_i32 = arith.constant 0 : i32
    %c0_i32_0 = arith.constant 0 : i32
    return %arg0, %c0_i32 : i32, i32
  }
  func.func @transform_1(%arg0: i32) -> (i32, i32) {
    %c0_i32 = arith.constant 0 : i32
    %c0_i32_0 = arith.constant 0 : i32
    %c0_i32_1 = arith.constant 0 : i32
    return %c0_i32, %c0_i32_0 : i32, i32
  }
  func.func @transform_2(%arg0: i32) -> (i32, i32) {
    %c0_i32 = arith.constant 0 : i32
    %c0_i32_0 = arith.constant 0 : i32
    %c0_i32_1 = arith.constant 0 : i32
    return %c0_i32, %c0_i32_0 : i32, i32
  }
  func.func @transform_3(%arg0: i32) -> (i32, i32) {
    %c0_i32 = arith.constant 0 : i32
    %c0_i32_0 = arith.constant 0 : i32
    %c0_i32_1 = arith.constant 0 : i32
    return %c0_i32, %c0_i32_0 : i32, i32
  }
  func.func @transform_4(%arg0: i32) -> (i32, i32) {
    %c0_i32 = arith.constant 0 : i32
    %c0_i32_0 = arith.constant 0 : i32
    %c0_i32_1 = arith.constant 0 : i32
    return %c0_i32, %c0_i32_0 : i32, i32
  }
  func.func @transform_5(%arg0: i32) -> (i32, i32) {
    %c0_i32 = arith.constant 0 : i32
    %c0_i32_0 = arith.constant 0 : i32
    %c0_i32_1 = arith.constant 0 : i32
    return %c0_i32, %c0_i32_0 : i32, i32
  }
  func.func @transform_6(%arg0: i32) -> (i32, i32) {
    %c0_i32 = arith.constant 0 : i32
    %c0_i32_0 = arith.constant 0 : i32
    %c0_i32_1 = arith.constant 0 : i32
    return %c0_i32, %c0_i32_0 : i32, i32
  }
  func.func @transform_7(%arg0: i32) -> (i32, i32) {
    %c0_i32 = arith.constant 0 : i32
    %c0_i32_0 = arith.constant 0 : i32
    return %arg0, %c0_i32 : i32, i32
  }
}

</mosaic_0001>

<bundles_post_ra>
// kernel: tpu_custom_call.1
= control target key start
LH: loop header
LB: loop body
LE: loop exit
PB: predicated region body
PF: predicated region fallthrough
CT: control target
= control target key end

     0   :  { %12 = vsyncpa [#allocation3], 0  ;;  %s1057_s0 = inlined_call_operand.vmem [shape: f32[2,32], index: 0, kind: input, shape index: {}]   ;;  %s1058_s1 = inlined_call_operand.vmem [shape: bf16[32,512], index: 1, kind: input, shape index: {}]   ;;  %s1059_s2 = inlined_call_operand.vmem [shape: f32[1,512], index: 2, kind: input, shape index: {}]   ;;  %s1060_s3 = inlined_call_operand.hbm [shape: bf16[512,128], index: 3, kind: input, shape index: {}]   ;;  %s1061_s4 = inlined_call_operand.vmem [shape: f32[1,128], index: 4, kind: input, shape index: {}]   ;;  %s1062_s5 = inlined_call_operand.vmem [shape: bf16[128,8], index: 5, kind: input, shape index: {}]   ;;  %s1063_s6 = inlined_call_operand.vmem [shape: f32[1,8], index: 6, kind: input, shape index: {}]   ;;  %s1064_s7 = inlined_call_operand.hbm [shape: f32[2,8], index: 7, kind: output, shape index: {}]  }
   0x1   :  { %13 = vsyncpa [#allocation4], 0  ;;  %s917_s24 = smov [#allocation2]   ;;  %s869_s28 = scalar_lea.hbm %s1060_s3, 4096 }
   0x2   :  { %s25_s25 = sshll.u32 %s917_s24, 4  ;;  %p870_p0 = scmp.ne.s32.totalorder %s1060_s3, %s869_s28  ;;  %s26_s25 = int_to_ptr.vmem [resolvable:$true] %s25_s25 }
   0x3   :  { %p873_p1 = scmp.lt.u32.totalorder %s869_s28, %s1060_s3 }
   0x5   :  { %p875_p2 = pnand %p873_p1, %p870_p0 }
   0x7   :  { %878 = shalt.err (!%p875_p2)
}
   0x8   :  { %s879_s10 = scalar_lea.vmem %s26_s25, 4096  ;;  %p884_p4 = scmp.lt.s32.totalorder %s26_s25, %s26_s25 }
   0x9   :  { %p880_p3 = scmp.ne.s32.totalorder %s26_s25, %s879_s10  ;;  %p885_p5 = scmp.lt.s32.totalorder %s879_s10, %s879_s10 }
   0xb   :  { %p886_p6 = por %p885_p5, %p884_p4 }
   0xd   :  { %p887_p7 = pnand %p886_p6, %p880_p3 }
   0xf   :  { %890 = shalt.err (!%p887_p7)
}
  0x10   :  { %s918_s11 = smov 64   ;;  %s919_s12 = smov 4  }
  0x11   :  { %31 = dma.hbm_to_vmem [thread:$0]  %s1060_s3, 4096, %s26_s25, [#allocation3], %s918_s11, %s918_s11, %s919_s12  }
  0x12   :  { %913 = dma.done.wait [#allocation3], 4096  }
  0x13   :  { %914 = vsyncadd [#allocation3], 4294963200  ;;  %v920_v0 = vmov 0   ;;  %v815_v1 = vld [vmem:[%s1058_s1 + $0x4] ss:$16 sps:$4 sm:$0xff]   ;;  %vm114_vm0 = vcmask 261120   ;;  %v54_v44 = vlaneseq }
  0x14   :  { %150 = vmatprep.mubr.bf16.mxu1 %v920_v0  ;;  %v817_v2 = vld [vmem:[%s1058_s1] ss:$16 sps:$4 sm:$0xff]   ;;  %118 = vmatprep.subr.bf16.mxu1 %v815_v1  ;;  %v818_v3 = vld [vmem:[%s1058_s1 + $0x24] ss:$16 sps:$4 sm:$0xff]   ;;  %v823_v6 = vld [vmem:[%s1058_s1 + $0xc] ss:$16 sps:$4 sm:$0xff]  }
  0x15   :  { %v820_v4 = vld [vmem:[%s1058_s1 + $0x20] ss:$16 sps:$4 sm:$0xff]   ;;  %119 = vmatpush1.bf16.msra.mxu1 %v817_v2  ;;  %v821_v7 = vld [vmem:[%s1058_s1 + $0x8] ss:$16 sps:$4 sm:$0xff]   ;;  %v826_v9 = vld [vmem:[%s1058_s1 + $0x2c] ss:$16 sps:$4 sm:$0xff]  }
  0x16   :  { %v42_v5 = vld [vmem:[%s1057_s0] sm:$0x3]  ;;  %120 = vmatprep.subr.bf16.mxu1 %v818_v3  ;;  %v829_v12 = vld [vmem:[#allocation2 + $0x48] sm:$0xff]   ;;  %v831_v14 = vld [vmem:[#allocation2 + $0x50] sm:$0xff]   ;;  %v921_v43 = vmov 0.0   ;;  %v55_v45 = vshrl.u32 %v54_v44, 7 }
  0x17   :  { %v43_v8 = vpack.c.bf16 %v42_v5, %v42_v5  ;;  %v827_v10 = vld [vmem:[#allocation2 + $0x40] sm:$0xff]   ;;  %v830_v13 = vld [vmem:[#allocation2 + $0x8] sm:$0xff]   ;;  %v833_v17 = vld [vmem:[#allocation2 + $0x10] sm:$0xff]   ;;  %vm922_vm1 = vmmov 0   ;;  %vm666_vm2 = vcmask 58368  }
  0x18   :  { %v828_v11 = vld [vmem:[#allocation2] sm:$0xff]   ;;  %735 = vmatprep.subr.bf16.mxu0 %v827_v10  ;;  %v824_v15 = vld [vmem:[%s1058_s1 + $0x28] ss:$16 sps:$4 sm:$0xff]   ;;  %v840_v24 = vld [vmem:[#allocation2 + $0xd0] sm:$0xff]   ;;  %v56_v46 = vsub.s32 0, %v55_v45  ;;  %v60_v48 = vsub.s32 1, %v55_v45 }
  0x19   :  { %121 = vmatpush1.bf16.msra.mxu1 %v820_v4  ;;  %736 = vmatpush3.bf16.msra.mxu0 %v828_v11  ;;  %v832_v16 = vld [vmem:[#allocation2 + $0xc0] sm:$0xff]   ;;  %v835_v18 = vld [vmem:[#allocation2 + $0x58] sm:$0xff]   ;;  %v836_v20 = vld [vmem:[#allocation2 + $0xc8] sm:$0xff]   ;;  %v64_v54 = vsub.s32 2, %v55_v45  ;;  %v68_v57 = vsub.s32 3, %v55_v45 }
  0x1a   :  { %159 = vmatprep.subr.bf16.mxu1 %v823_v6  ;;  %737 = vmatprep.subr.bf16.mxu0 %v829_v12  ;;  %v834_v19 = vld [vmem:[#allocation2 + $0x80] sm:$0xff]   ;;  %v837_v21 = vld [vmem:[#allocation2 + $0x18] sm:$0xff]   ;;  %v838_v23 = vld [vmem:[#allocation2 + $0x88] sm:$0xff]  }
  0x1b   :  { %v839_v22 = vld [vmem:[#allocation2 + $0x60] sm:$0xff]   ;;  %v843_v26 = vld [vmem:[#allocation2 + $0x68] sm:$0xff]   ;;  %v842_v27 = vld [vmem:[#allocation2 + $0x90] sm:$0xff]  }
  0x1c   :  { %691 = vmatmul.mubr.msk.bf16.vlgmr.msra.gmra.mrb[0].mxu1 %vm114_vm0, %v43_v8  ;;  %v841_v25 = vld [vmem:[#allocation2 + $0x20] sm:$0xff]   ;;  %v844_v28 = vld [vmem:[#allocation2 + $0xd8] sm:$0xff]   ;;  %v845_v29 = vld [vmem:[#allocation2 + $0x28] sm:$0xff]  }
  0x1d   :  { %160 = vmatpush1.bf16.msra.mxu1 %v821_v7  ;;  %191 = vmatprep.mubr.bf16.mxu1 %v920_v0  ;;  %v846_v30 = vld [vmem:[#allocation2 + $0x98] sm:$0xff]   ;;  %v847_v31 = vld [vmem:[#allocation2 + $0x70] sm:$0xff]   ;;  %v848_v32 = vld [vmem:[#allocation2 + $0xe0] sm:$0xff]  }
  0x1e   :  { %161 = vmatprep.subr.bf16.mxu1 %v826_v9  ;;  %738 = vmatpush3.bf16.msra.mxu0 %v830_v13  ;;  %v849_v33 = vld [vmem:[#allocation2 + $0x30] sm:$0xff]   ;;  %v850_v34 = vld [vmem:[#allocation2 + $0xa0] sm:$0xff]   ;;  %v851_v35 = vld [vmem:[#allocation2 + $0x78] sm:$0xff]  }
  0x1f   :  { %739 = vmatprep.subr.bf16.mxu0 %v831_v14  ;;  %v852_v36 = vld [vmem:[#allocation2 + $0xe8] sm:$0xff]   ;;  %v853_v37 = vld [vmem:[#allocation2 + $0x38] sm:$0xff]   ;;  %v855_v39 = vld [vmem:[#allocation2 + $0xf0] sm:$0xff]  }
  0x20   :  { %v854_v38 = vld [vmem:[#allocation2 + $0xa8] sm:$0xff]   ;;  %v856_v40 = vld [vmem:[#allocation2 + $0xb0] sm:$0xff]   ;;  %v857_v41 = vld [vmem:[#allocation2 + $0xf8] sm:$0xff]  }
  0x21   :  { %162 = vmatpush1.bf16.msra.mxu1 %v824_v15  ;;  %v858_v42 = vld [vmem:[#allocation2 + $0xb8] sm:$0xff]   ;;  %v52_v47 = vld [vmem:[%s1059_s2] sm:$0xf]  ;;  %v861_v13 = vld [vmem:[%s1062_s5 + $0x10] sm:$0xff]  }
  0x22   :  { %757 = vmatprep.subr.bf16.mxu1 %v832_v16  ;;  %740 = vmatpush3.bf16.msra.mxu0 %v833_v17  ;;  %v57_v49 = vrot.slane %v52_v47, %v56_v46  ;;  %v61_v50 = vrot.slane %v52_v47, %v60_v48  ;;  %v65_v61 = vrot.slane %v52_v47, %v64_v54  ;;  %v859_v1 = vld [vmem:[%s1062_s5] sm:$0xff]   ;;  %v862_v15 = vld [vmem:[%s1062_s5 + $0x18] sm:$0xff]   ;;  %v864_v17 = vld [vmem:[%s1062_s5 + $0x28] sm:$0xff]  }
  0x23   :  { %741 = vmatprep.subr.bf16.mxu0 %v835_v18  ;;  %v69_v63 = vrot.slane %v52_v47, %v68_v57  ;;  %v863_v16 = vld [vmem:[%s1062_s5 + $0x20] sm:$0xff]   ;;  %v865_v18 = vld [vmem:[%s1062_s5 + $0x30] sm:$0xff]  }
  0x24   :  { %692 = vmatmul.mubr.msk.bf16.vlgmr.msra.gmra.mrb[4].mxu1 %vm114_vm0, %v43_v8  ;;  %v860_v8 = vld [vmem:[%s1062_s5 + $0x8] sm:$0xff]  }
  0x25   :  { %758 = vmatpush3.bf16.msra.mxu1 %v834_v19  ;;  %v866_v19 = vld [vmem:[%s1062_s5 + $0x38] sm:$0xff]  }
  0x26   :  { %759 = vmatprep.subr.bf16.mxu1 %v836_v20  ;;  %742 = vmatpush3.bf16.msra.mxu0 %v837_v21 }
  0x27   :  { %743 = vmatprep.subr.bf16.mxu0 %v839_v22 }
  0x29   :  { %760 = vmatpush3.bf16.msra.mxu1 %v838_v23 }
  0x2a   :  { %761 = vmatprep.subr.bf16.mxu1 %v840_v24  ;;  %744 = vmatpush3.bf16.msra.mxu0 %v841_v25  ;;  %v693_v25 = vld [vmem:[%s1061_s4] ss:$0 sm:$0xff]  ;;  %s923_s4 = smov [#allocation5]  }
  0x2b   :  { %745 = vmatprep.subr.bf16.mxu0 %v843_v26  ;;  %s674_s26 = sshll.u32 %s923_s4, 4  ;;  %s675_s26 = int_to_ptr.vmem [resolvable:$true] %s674_s26 }
  0x2c   :  { %s891_s27 = scalar_lea.vmem %s675_s26, 32  ;;  %p896_p9 = scmp.lt.s32.totalorder %s675_s26, %s675_s26 }
  0x2d   :  { %762 = vmatpush3.bf16.msra.mxu1 %v842_v27  ;;  %p892_p8 = scmp.ne.s32.totalorder %s675_s26, %s891_s27  ;;  %p897_p10 = scmp.lt.s32.totalorder %s891_s27, %s891_s27 }
  0x2e   :  { %763 = vmatprep.subr.bf16.mxu1 %v844_v28  ;;  %746 = vmatpush3.bf16.msra.mxu0 %v845_v29 }
  0x2f   :  { %747 = vmatprep.subr.bf16.mxu0 %v847_v31  ;;  %p898_p11 = por %p897_p10, %p896_p9 }
  0x31   :  { %764 = vmatpush3.bf16.msra.mxu1 %v846_v30  ;;  %p899_p12 = pnand %p898_p11, %p892_p8 }
  0x32   :  { %765 = vmatprep.subr.bf16.mxu1 %v848_v32  ;;  %748 = vmatpush3.bf16.msra.mxu0 %v849_v33 }
  0x33   :  { %749 = vmatprep.subr.bf16.mxu0 %v851_v35  ;;  %v726_v35 = vld [vmem:[%s1063_s6] ss:$0 sm:$0xff] }
  0x35   :  { %766 = vmatpush3.bf16.msra.mxu1 %v850_v34 }
  0x36   :  { %767 = vmatprep.subr.bf16.mxu1 %v852_v36  ;;  %750 = vmatpush3.bf16.msra.mxu0 %v853_v37 }
  0x37   :  { %788 = vmatprep.subr.bf16.mxu0 %v921_v43 }
  0x39   :  { %768 = vmatpush3.bf16.msra.mxu1 %v854_v38 }
  0x3a   :  { %769 = vmatprep.subr.bf16.mxu1 %v855_v39 }
  0x3d   :  { %770 = vmatpush3.bf16.msra.mxu1 %v856_v40 }
  0x3e   :  { %771 = vmatprep.subr.bf16.mxu1 %v857_v41 }
  0x41   :  { %772 = vmatpush3.bf16.msra.mxu1 %v858_v42 }
  0xef   :  { %v152_v51 = vpop.f32.mrb[0].mxu1 }
  0xf0   :  { %v153_v52 = vadd.f32 %v152_v51, %v57_v49  ;;  %v154_v53 = vpop.f32.mrb[1].mxu1 }
  0xf1   :  { %v155_v55 = vadd.f32 %v154_v53, %v61_v50  ;;  %v156_v56 = vpop.f32.mrb[2].mxu1 }
  0xf2   :  { %v200_v58 = vpack.c.bf16 %v153_v52, %v153_v52  ;;  %v157_v59 = vpop.f32.mrb[3].mxu1 }
  0xf3   :  { %v201_v60 = vpack.c.bf16 %v155_v55, %v155_v55 }
  0xf4   :  { %v204_v2 = vmax.bf16 %v920_v0, %v200_v58 }
  0xf5   :  { %v205_v62 = vmax.bf16 %v920_v0, %v201_v60 }
  0xf7   :  { %v193_v3 = vpop.f32.mrb[4].mxu1  ;;  %503 = vmatprep.mubr.bf16.mxu0 %v205_v62 }
  0xf8   :  { %v194_v4 = vadd.f32 %v193_v3, %v65_v61  ;;  %v195_v5 = vpop.f32.mrb[5].mxu1  ;;  %504 = vmatmul.mubr.bf16.vlgmr.msra.gmra.mrb[0].mxu0 %v204_v2 }
  0xf9   :  { %v196_v6 = vadd.f32 %v195_v5, %v69_v63  ;;  %v197_v7 = vpop.f32.mrb[6].mxu1  ;;  %789 = vmatpush3.bf16.msra.mxu0 %v859_v1  ;;  %804 = vmatprep.mubr.msk.bf16.mxu0 %vm922_vm1, %v921_v43 }
  0xfa   :  { %v202_v9 = vpack.c.bf16 %v194_v4, %v194_v4  ;;  %v198_v10 = vpop.f32.mrb[7].mxu1  ;;  %790 = vmatprep.subr.bf16.mxu0 %v921_v43 }
  0xfb   :  { %v203_v11 = vpack.c.bf16 %v196_v6, %v196_v6 }
  0xfc   :  { %v206_v14 = vmax.bf16 %v920_v0, %v202_v9 }
  0xfd   :  { %v207_v12 = vmax.bf16 %v920_v0, %v203_v11  ;;  %791 = vmatpush3.bf16.msra.mxu0 %v860_v8 }
  0xfe   :  { %792 = vmatprep.subr.bf16.mxu0 %v921_v43 }
  0xff   :  { %543 = vmatprep.mubr.bf16.mxu1 %v207_v12 }
 0x100   :  { %544 = vmatmul.mubr.bf16.vlgmr.msra.gmra.mrb[8].mxu1 %v206_v14 }
 0x101   :  { %793 = vmatpush3.bf16.msra.mxu0 %v861_v13 }
 0x102   :  { %794 = vmatprep.subr.bf16.mxu0 %v921_v43 }
 0x105   :  { %795 = vmatpush3.bf16.msra.mxu0 %v862_v15 }
 0x106   :  { %796 = vmatprep.subr.bf16.mxu0 %v921_v43 }
 0x109   :  { %797 = vmatpush3.bf16.msra.mxu0 %v863_v16 }
 0x10a   :  { %798 = vmatprep.subr.bf16.mxu0 %v921_v43 }
 0x10d   :  { %799 = vmatpush3.bf16.msra.mxu0 %v864_v17 }
 0x10e   :  { %800 = vmatprep.subr.bf16.mxu0 %v921_v43 }
 0x111   :  { %801 = vmatpush3.bf16.msra.mxu0 %v865_v18 }
 0x112   :  { %802 = vmatprep.subr.bf16.mxu0 %v921_v43 }
 0x115   :  { %803 = vmatpush3.bf16.msra.mxu0 %v866_v19 }
 0x1cb   :  { %v751_v20 = vpop.f32.mrb[0].mxu0 }
 0x1cc   :  { %v752_v21 = vpop.f32.mrb[1].mxu0 }
 0x1cd   :  { %v753_v22 = vadd.f32 %v752_v21, %v751_v20  ;;  %v754_v23 = vpop.f32.mrb[2].mxu0 }
 0x1ce   :  { %v755_v24 = vpop.f32.mrb[3].mxu0 }
 0x1cf   :  { %v506_v28 = vadd.f32 %v753_v22, %v693_v25 }
 0x1d3   :  { %v773_v26 = vpop.f32.mrb[8].mxu1 }
 0x1d4   :  { %v774_v27 = vpop.f32.mrb[9].mxu1 }
 0x1d5   :  { %v775_v29 = vadd.f32 %v774_v27, %v773_v26  ;;  %v776_v30 = vpop.f32.mrb[10].mxu1 }
 0x1d6   :  { %v777_v31 = vpop.f32.mrb[11].mxu1 }
 0x1d7   :  { %v546_v32 = vadd.f32 %v775_v29, %v506_v28 }
 0x1d9   :  { %v551_v33 = vpack.c.bf16 %v546_v32, %v546_v32 }
 0x1db   :  { %v552_v34 = vmax.bf16 %v920_v0, %v551_v33 }
 0x1dd   :  { %805 = vmatmul.mubr.bf16.vlgmr.msra.gmra.mrb[4].mxu0 %v552_v34 }
 0x2b0   :  { %v658_v36 = vpop.f32.mrb[4].mxu0 }
 0x2b1   :  { %v659_v37 = vadd.f32 %v726_v35, %v658_v36  ;;  %v806_v38 = vpop.f32.mrb[5].mxu0 }
 0x2b2   :  { %v661_v39 = vpop.f32.mrb[6].mxu0 }
 0x2b3   :  { %867 = vtanh.f32 %v659_v37  ;;  %v807_v40 = vpop.f32.mrb[7].mxu0 }
 0x2bd   :  { %v868_v41 = vpop.eup %867 }
 0x2be   :  { %v665_v42 = vmul.f32 10.0, %v868_v41 }
 0x2c0   :  { %667 = vst.msk [vmem:[#allocation5] sm:$0x3] %vm666_vm2, %v665_v42 }
 0x2c1   :  { %902 = shalt.err (!%p899_p12)
}
 0x2c2   :  { %s903_s29 = scalar_lea.hbm %s1064_s7, 32 }
 0x2c3   :  { %p904_p13 = scmp.ne.s32.totalorder %s1064_s7, %s903_s29  ;;  %p907_p0 = scmp.lt.u32.totalorder %s903_s29, %s1064_s7 }
 0x2c5   :  { %p909_p1 = pnand %p907_p0, %p904_p13 }
 0x2c7   :  { %912 = shalt.err (!%p909_p1)
}
 0x2c8   :  { %677 = dma.vmem_to_hbm [thread:$0]  %s675_s26, 32, %s1064_s7, [#allocation4]  }
 0x2c9   :  { %915 = dma.done.wait [#allocation4], 32  }
 0x2ca   :  { %916 = vsyncadd [#allocation4], 4294967264 }
 0x2cb   :  { %681 = vsyncpa [#allocation3], 1 }
 0x2cc   :  { %682 = vsyncpa [#allocation4], 1 }

</bundles_post_ra>
